<compile_context>
chip_gen: v6e
topology: v6e:2x2x1
jax: 0.10.0
libtpu: 0.0.40
codegen_flags: <defaults>
</compile_context>

<pallas_src>
import numpy as np
import jax
import jax.numpy as jnp
from jax import lax
from jax.experimental import pallas as pl
from jax.experimental.pallas import tpu as pltpu


# Contract the last dim of both operands: x (B, tk) · W (tn, tk)  ->  (B, tn)   (= x @ W.T)
_DN_TRANS_B = (((1,), (1,)), ((), ()))


# ----------------------------- kernels -----------------------------

def _noisy_train_kernel(x_ref, wmu_ref, wsig_ref, ein_ref, eout_ref,
                        bmu_ref, bsig_ref, beps_ref, o_ref,
                        acc_mu_ref, acc_sig_ref):
    k = pl.program_id(1)

    @pl.when(k == 0)
    def _():
        acc_mu_ref[...] = jnp.zeros_like(acc_mu_ref)
        acc_sig_ref[...] = jnp.zeros_like(acc_sig_ref)

    x = x_ref[...]                                     # (B_pad, tk)
    # mu term: x @ Wmu.T
    acc_mu_ref[...] += lax.dot_general(
        x, wmu_ref[...], _DN_TRANS_B, preferred_element_type=jnp.float32)
    # sigma term: (x * eps_in) @ Wsig.T   (eps_out applied once, at finalize)
    xs = x * ein_ref[...]                              # (B_pad, tk) * (1, tk)
    acc_sig_ref[...] += lax.dot_general(
        xs, wsig_ref[...], _DN_TRANS_B, preferred_element_type=jnp.float32)

    @pl.when(k == pl.num_programs(1) - 1)
    def _():
        b = bmu_ref[...] + bsig_ref[...] * beps_ref[...]          # (1, tn)
        o_ref[...] = (acc_mu_ref[...] + eout_ref[...] * acc_sig_ref[...] + b
                      ).astype(o_ref.dtype)


def _eval_kernel(x_ref, wmu_ref, bmu_ref, o_ref, acc_ref):
    k = pl.program_id(1)

    @pl.when(k == 0)
    def _():
        acc_ref[...] = jnp.zeros_like(acc_ref)

    acc_ref[...] += lax.dot_general(
        x_ref[...], wmu_ref[...], _DN_TRANS_B, preferred_element_type=jnp.float32)

    @pl.when(k == pl.num_programs(1) - 1)
    def _():
        o_ref[...] = (acc_ref[...] + bmu_ref[...]).astype(o_ref.dtype)


# ----------------------------- wrapper helpers -----------------------------

def _round_up(x, m):
    return (x + m - 1) // m * m


def _pick_tile(dim_pad, prefer_multi=False):
    """Largest tile in {1024,512,256,128} dividing dim_pad.

    prefer_multi: prefer a tile that leaves >= 2 grid steps on this axis
    (so the 'parallel' Out axis can split across both v7x TensorCores)."""
    for c in (1024, 512, 256, 128):
        if dim_pad % c == 0:
            if prefer_multi and c > 128 and dim_pad // c < 2:
                continue
            return c
    return dim_pad  # unreachable: dim_pad is a multiple of 128


def _pad2(a, shape, dtype):
    """Cast + zero-pad a 2-D array; no copy issued when already the right shape/dtype."""
    a = a.astype(dtype)
    if a.shape == shape:
        return a
    return jnp.zeros(shape, dtype).at[:a.shape[0], :a.shape[1]].set(a)


def _pad_row(v, n, dtype):
    """Cast + zero-pad a 1-D vector into a (1, n) row."""
    v = v.astype(dtype)
    if v.shape[0] == n:
        return v[None, :]
    return jnp.zeros((1, n), dtype).at[0, :v.shape[0]].set(v)


# ----------------------------- forward -----------------------------

def noisy_linear_forward(x, weight_mu, weight_sigma, epsilon_in, epsilon_out,
                         bias_mu, bias_sigma, bias_epsilon, training=True,
                         param_dtype=jnp.float32):
    """Pallas NoisyLinear forward.

    x:               (B, In)   float32
    weight_mu/sigma: (Out, In) float32   (native PyTorch layout; never transposed)
    epsilon_in:      (In,)     float32   factorized noise (weight_epsilon = eps_out ⊗ eps_in)
    epsilon_out:     (Out,)    float32
    bias_*:          (Out,)    float32
    """
    B, In = x.shape
    Out = weight_mu.shape[0]

    B_pad = max(_round_up(B, 8), 8)
    In_pad = _round_up(In, 128)
    Out_pad = _round_up(Out, 128)
    tk = _pick_tile(In_pad)
    tn = _pick_tile(Out_pad, prefer_multi=True)
    grid = (Out_pad // tn, In_pad // tk)
    n_out_tiles, n_in_tiles = grid

    f32 = jnp.float32
    x_p = _pad2(x, (B_pad, In_pad), f32)
    wmu_p = _pad2(weight_mu, (Out_pad, In_pad), param_dtype)
    bmu_p = _pad_row(bias_mu, Out_pad, f32)

    x_spec = pl.BlockSpec((B_pad, tk), lambda j, k: (0, k))
    w_spec = pl.BlockSpec((tn, tk), lambda j, k: (j, k))          # (Out, In) layout
    in_row_spec = pl.BlockSpec((1, tk), lambda j, k: (0, k))      # eps_in row
    out_row_spec = pl.BlockSpec((1, tn), lambda j, k: (0, j))     # bias / eps_out rows
    out_spec = pl.BlockSpec((B_pad, tn), lambda j, k: (0, j))

    n_weight_streams = 2 if training else 1
    # Double-buffered input tiles + output buffers + accumulators (rows are negligible).
    itemsize = jnp.dtype(param_dtype).itemsize
    vmem_est = (n_weight_streams * 2 * tn * tk * itemsize          # weight streams
                + 2 * B_pad * tk * 4                               # x tiles
                + 2 * B_pad * tn * 4                               # output buffers
                + n_weight_streams * B_pad * tn * 4)               # f32 accumulators
    vmem_limit = int(min(max(2 * vmem_est, 32 * 1024 * 1024), 48 * 1024 * 1024))

    cparams = pltpu.CompilerParams(
        dimension_semantics=("parallel", "arbitrary"),
        vmem_limit_bytes=vmem_limit)

    if training:
        wsig_p = _pad2(weight_sigma, (Out_pad, In_pad), param_dtype)
        ein_p = _pad_row(epsilon_in, In_pad, f32)
        eout_p = _pad_row(epsilon_out, Out_pad, f32)
        bsig_p = _pad_row(bias_sigma, Out_pad, f32)
        beps_p = _pad_row(bias_epsilon, Out_pad, f32)

        cost = pl.CostEstimate(
            flops=4 * B_pad * In_pad * Out_pad,                    # two matmuls
            transcendentals=0,
            bytes_accessed=(4 * B_pad * In_pad * n_out_tiles       # x re-read per Out tile
                            + 2 * In_pad * Out_pad * itemsize      # Wmu + Wsig
                            + 4 * (In_pad + 4 * Out_pad)           # noise / bias rows
                            + 4 * B_pad * Out_pad))                # output

        out = pl.pallas_call(
            _noisy_train_kernel,
            out_shape=jax.ShapeDtypeStruct((B_pad, Out_pad), jnp.float32),
            grid_spec=pltpu.PrefetchScalarGridSpec(
                num_scalar_prefetch=0,
                grid=grid,
                in_specs=[
                    x_spec,          # x
                    w_spec,          # weight_mu    (Out, In)
                    w_spec,          # weight_sigma (Out, In)
                    in_row_spec,     # eps_in  row
                    out_row_spec,    # eps_out row
                    out_row_spec,    # bias_mu
                    out_row_spec,    # bias_sigma
                    out_row_spec,    # bias_epsilon
                ],
                out_specs=out_spec,
                scratch_shapes=[pltpu.VMEM((B_pad, tn), jnp.float32),
                                pltpu.VMEM((B_pad, tn), jnp.float32)]),
            compiler_params=cparams,
            cost_estimate=cost,
        )(x_p, wmu_p, wsig_p, ein_p, eout_p, bmu_p, bsig_p, beps_p)
    else:
        cost = pl.CostEstimate(
            flops=2 * B_pad * In_pad * Out_pad,
            transcendentals=0,
            bytes_accessed=(4 * B_pad * In_pad * n_out_tiles
                            + In_pad * Out_pad * itemsize
                            + 4 * Out_pad
                            + 4 * B_pad * Out_pad))

        out = pl.pallas_call(
            _eval_kernel,
            out_shape=jax.ShapeDtypeStruct((B_pad, Out_pad), jnp.float32),
            grid_spec=pltpu.PrefetchScalarGridSpec(
                num_scalar_prefetch=0,
                grid=grid,
                in_specs=[x_spec, w_spec, out_row_spec],
                out_specs=out_spec,
                scratch_shapes=[pltpu.VMEM((B_pad, tn), jnp.float32)]),
            compiler_params=cparams,
            cost_estimate=cost,
        )(x_p, wmu_p, bmu_p)

    return out[:B, :Out]


# ---------------- deterministic parameter / noise construction ----------------

def _scale_noise(key, size):
    # f(x) = sign(x) * sqrt(|x|)
    x = jax.random.normal(key, (size,), dtype=jnp.float32)
    return jnp.sign(x) * jnp.sqrt(jnp.abs(x))


def make_noisy_linear_params(key, in_features, out_features, std_init=0.4):
    k_wmu, k_bmu, k_ein, k_eout, k_beps = jax.random.split(key, 5)
    mu_range = 1.0 / np.sqrt(in_features)

    weight_mu = jax.random.uniform(
        k_wmu, (out_features, in_features), jnp.float32, -mu_range, mu_range)
    weight_sigma = jnp.full((out_features, in_features),
                            std_init / np.sqrt(in_features), jnp.float32)
    bias_mu = jax.random.uniform(
        k_bmu, (out_features,), jnp.float32, -mu_range, mu_range)
    bias_sigma = jnp.full((out_features,),
                          std_init / np.sqrt(out_features), jnp.float32)

    # Factorized Gaussian noise (reset_noise()); the full (Out, In) weight_epsilon
    # matrix is never materialized for the kernel — only its two 1-D factors.
    epsilon_in = _scale_noise(k_ein, in_features)
    epsilon_out = _scale_noise(k_eout, out_features)
    bias_epsilon = _scale_noise(k_beps, out_features)

    return dict(weight_mu=weight_mu, weight_sigma=weight_sigma,
                epsilon_in=epsilon_in, epsilon_out=epsilon_out,
                bias_mu=bias_mu, bias_sigma=bias_sigma,
                bias_epsilon=bias_epsilon)


if __name__ == "__main__":
    key = jax.random.PRNGKey(0)
    k_params, k_x = jax.random.split(key)

    batch, in_features, out_features = 8, 32, 64
    params = make_noisy_linear_params(k_params, in_features, out_features)
    x = jax.random.normal(k_x, (batch, in_features), dtype=jnp.float32)

    # Training-mode forward (module defaults to training=True after __init__).
    y = noisy_linear_forward(
        x,
        params["weight_mu"], params["weight_sigma"],
        params["epsilon_in"], params["epsilon_out"],
        params["bias_mu"], params["bias_sigma"], params["bias_epsilon"],
        training=True,
    )
    y = jax.block_until_ready(y)

    # Pure-JAX reference (module semantics: weight_epsilon = eps_out ⊗ eps_in).
    weight_epsilon = jnp.outer(params["epsilon_out"], params["epsilon_in"])
    w_ref = params["weight_mu"] + params["weight_sigma"] * weight_epsilon
    b_ref = params["bias_mu"] + params["bias_sigma"] * params["bias_epsilon"]
    y_ref = x @ w_ref.T + b_ref
    np.testing.assert_allclose(np.asarray(y), np.asarray(y_ref),
                               rtol=1e-5, atol=1e-5)

    # Eval-mode forward (mu-only kernel).
    y_eval = jax.block_until_ready(noisy_linear_forward(
        x,
        params["weight_mu"], params["weight_sigma"],
        params["epsilon_in"], params["epsilon_out"],
        params["bias_mu"], params["bias_sigma"], params["bias_epsilon"],
        training=False,
    ))
    y_eval_ref = x @ params["weight_mu"].T + params["bias_mu"]
    np.testing.assert_allclose(np.asarray(y_eval), np.asarray(y_eval_ref),
                               rtol=1e-5, atol=1e-5)

    print("KERNEL_OK")
</pallas_src>

<mosaic_0001>
module attributes {stable_mosaic.version = 11 : i64} {
  func.func @_noisy_train_kernel(%arg0: i32, %arg1: i32, %arg2: memref<8x128xf32, #tpu.memory_space<vmem>>, %arg3: memref<128x128xf32, #tpu.memory_space<vmem>>, %arg4: memref<128x128xf32, #tpu.memory_space<vmem>>, %arg5: memref<1x128xf32, #tpu.memory_space<vmem>>, %arg6: memref<1x128xf32, #tpu.memory_space<vmem>>, %arg7: memref<1x128xf32, #tpu.memory_space<vmem>>, %arg8: memref<1x128xf32, #tpu.memory_space<vmem>>, %arg9: memref<1x128xf32, #tpu.memory_space<vmem>>, %arg10: memref<8x128xf32, #tpu.memory_space<vmem>>, %arg11: memref<8x128xf32, #tpu.memory_space<vmem>>, %arg12: memref<8x128xf32, #tpu.memory_space<vmem>>) attributes {dimension_semantics = [#tpu.dimension_semantics<parallel>, #tpu.dimension_semantics<arbitrary>], iteration_bounds = array<i64: 1, 1>, scalar_prefetch = 0 : i64, scratch_operands = 2 : i64, tpu.core_type = #tpu.core_type<tc>, window_params = [{transform_indices = @transform_0, window_bounds = array<i64: 8, 128>}, {transform_indices = @transform_1, window_bounds = array<i64: 128, 128>}, {transform_indices = @transform_2, window_bounds = array<i64: 128, 128>}, {transform_indices = @transform_3, window_bounds = array<i64: 1, 128>}, {transform_indices = @transform_4, window_bounds = array<i64: 1, 128>}, {transform_indices = @transform_5, window_bounds = array<i64: 1, 128>}, {transform_indices = @transform_6, window_bounds = array<i64: 1, 128>}, {transform_indices = @transform_7, window_bounds = array<i64: 1, 128>}, {transform_indices = @transform_8, window_bounds = array<i64: 8, 128>}]} {
    %c0_i32 = arith.constant 0 : i32
    %0 = arith.cmpi eq, %arg1, %c0_i32 : i32
    %1 = arith.extui %0 : i1 to i32
    %c0_i32_0 = arith.constant 0 : i32
    %2 = arith.cmpi ne, %1, %c0_i32_0 : i32
    scf.if %2 {
      %cst_19 = arith.constant 0.000000e+00 : f32
      %20 = vector.broadcast %cst_19 : f32 to vector<8x128xf32>
      %c0_20 = arith.constant 0 : index
      %c0_21 = arith.constant 0 : index
      %21 = vector.load %arg11[%c0_20, %c0_21] : memref<8x128xf32, #tpu.memory_space<vmem>>, vector<8x128xf32>
      tpu.vector_store %arg11[%c0_20, %c0_21], %20 {strides = array<i32>} : memref<8x128xf32, #tpu.memory_space<vmem>>, vector<8x128xf32>,
      %cst_22 = arith.constant 0.000000e+00 : f32
      %22 = vector.broadcast %cst_22 : f32 to vector<8x128xf32>
      %c0_23 = arith.constant 0 : index
      %c0_24 = arith.constant 0 : index
      %23 = vector.load %arg12[%c0_23, %c0_24] : memref<8x128xf32, #tpu.memory_space<vmem>>, vector<8x128xf32>
      tpu.vector_store %arg12[%c0_23, %c0_24], %22 {strides = array<i32>} : memref<8x128xf32, #tpu.memory_space<vmem>>, vector<8x128xf32>,
    } else {
    }
    %c0 = arith.constant 0 : index
    %c0_1 = arith.constant 0 : index
    %3 = vector.load %arg2[%c0, %c0_1] : memref<8x128xf32, #tpu.memory_space<vmem>>, vector<8x128xf32>
    %c0_2 = arith.constant 0 : index
    %c0_3 = arith.constant 0 : index
    %4 = vector.load %arg11[%c0_2, %c0_3] : memref<8x128xf32, #tpu.memory_space<vmem>>, vector<8x128xf32>
    %c0_4 = arith.constant 0 : index
    %c0_5 = arith.constant 0 : index
    %5 = vector.load %arg3[%c0_4, %c0_5] : memref<128x128xf32, #tpu.memory_space<vmem>>, vector<128x128xf32>
    %cst = arith.constant dense<0.000000e+00> : vector<8x128xf32>
    %6 = tpu.matmul %3, %5, %cst {dimension_numbers = #tpu.dot_dimension_numbers<[1], [1], [0], [0], [0, 0, 1, 0], [], []>} : vector<8x128xf32>, vector<128x128xf32>, vector<8x128xf32> -> vector<8x128xf32>
    %7 = arith.addf %4, %6 : vector<8x128xf32>
    %c0_6 = arith.constant 0 : index
    %c0_7 = arith.constant 0 : index
    %8 = vector.load %arg11[%c0_6, %c0_7] : memref<8x128xf32, #tpu.memory_space<vmem>>, vector<8x128xf32>
    tpu.vector_store %arg11[%c0_6, %c0_7], %7 {strides = array<i32>} : memref<8x128xf32, #tpu.memory_space<vmem>>, vector<8x128xf32>,
    %c0_8 = arith.constant 0 : index
    %c0_9 = arith.constant 0 : index
    %9 = vector.load %arg5[%c0_8, %c0_9] : memref<1x128xf32, #tpu.memory_space<vmem>>, vector<1x128xf32>
    %10 = vector.broadcast %9 : vector<1x128xf32> to vector<8x128xf32>
    %11 = arith.mulf %3, %10 : vector<8x128xf32>
    %c0_10 = arith.constant 0 : index
    %c0_11 = arith.constant 0 : index
    %12 = vector.load %arg12[%c0_10, %c0_11] : memref<8x128xf32, #tpu.memory_space<vmem>>, vector<8x128xf32>
    %c0_12 = arith.constant 0 : index
    %c0_13 = arith.constant 0 : index
    %13 = vector.load %arg4[%c0_12, %c0_13] : memref<128x128xf32, #tpu.memory_space<vmem>>, vector<128x128xf32>
    %cst_14 = arith.constant dense<0.000000e+00> : vector<8x128xf32>
    %14 = tpu.matmul %11, %13, %cst_14 {dimension_numbers = #tpu.dot_dimension_numbers<[1], [1], [0], [0], [0, 0, 1, 0], [], []>} : vector<8x128xf32>, vector<128x128xf32>, vector<8x128xf32> -> vector<8x128xf32>
    %15 = arith.addf %12, %14 : vector<8x128xf32>
    %c0_15 = arith.constant 0 : index
    %c0_16 = arith.constant 0 : index
    %16 = vector.load %arg12[%c0_15, %c0_16] : memref<8x128xf32, #tpu.memory_space<vmem>>, vector<8x128xf32>
    tpu.vector_store %arg12[%c0_15, %c0_16], %15 {strides = array<i32>} : memref<8x128xf32, #tpu.memory_space<vmem>>, vector<8x128xf32>,
    %c0_i32_17 = arith.constant 0 : i32
    %17 = arith.cmpi eq, %arg1, %c0_i32_17 : i32
    %18 = arith.extui %17 : i1 to i32
    %c0_i32_18 = arith.constant 0 : i32
    %19 = arith.cmpi ne, %18, %c0_i32_18 : i32
    scf.if %19 {
      %c0_19 = arith.constant 0 : index
      %c0_20 = arith.constant 0 : index
      %20 = vector.load %arg7[%c0_19, %c0_20] : memref<1x128xf32, #tpu.memory_space<vmem>>, vector<1x128xf32>
      %c0_21 = arith.constant 0 : index
      %c0_22 = arith.constant 0 : index
      %21 = vector.load %arg8[%c0_21, %c0_22] : memref<1x128xf32, #tpu.memory_space<vmem>>, vector<1x128xf32>
      %c0_23 = arith.constant 0 : index
      %c0_24 = arith.constant 0 : index
      %22 = vector.load %arg9[%c0_23, %c0_24] : memref<1x128xf32, #tpu.memory_space<vmem>>, vector<1x128xf32>
      %23 = arith.mulf %21, %22 : vector<1x128xf32>
      %24 = arith.addf %20, %23 : vector<1x128xf32>
      %c0_25 = arith.constant 0 : index
      %c0_26 = arith.constant 0 : index
      %25 = vector.load %arg11[%c0_25, %c0_26] : memref<8x128xf32, #tpu.memory_space<vmem>>, vector<8x128xf32>
      %c0_27 = arith.constant 0 : index
      %c0_28 = arith.constant 0 : index
      %26 = vector.load %arg6[%c0_27, %c0_28] : memref<1x128xf32, #tpu.memory_space<vmem>>, vector<1x128xf32>
      %c0_29 = arith.constant 0 : index
      %c0_30 = arith.constant 0 : index
      %27 = vector.load %arg12[%c0_29, %c0_30] : memref<8x128xf32, #tpu.memory_space<vmem>>, vector<8x128xf32>
      %28 = vector.broadcast %26 : vector<1x128xf32> to vector<8x128xf32>
      %29 = arith.mulf %28, %27 : vector<8x128xf32>
      %30 = arith.addf %25, %29 : vector<8x128xf32>
      %31 = vector.broadcast %24 : vector<1x128xf32> to vector<8x128xf32>
      %32 = arith.addf %30, %31 : vector<8x128xf32>
      %c0_31 = arith.constant 0 : index
      %c0_32 = arith.constant 0 : index
      %33 = vector.load %arg10[%c0_31, %c0_32] : memref<8x128xf32, #tpu.memory_space<vmem>>, vector<8x128xf32>
      tpu.vector_store %arg10[%c0_31, %c0_32], %32 {strides = array<i32>} : memref<8x128xf32, #tpu.memory_space<vmem>>, vector<8x128xf32>,
    } else {
    }
    return
  }
  func.func @transform_0(%arg0: i32, %arg1: i32) -> (i32, i32) {
    %c0_i32 = arith.constant 0 : i32
    %c0_i32_0 = arith.constant 0 : i32
    return %c0_i32, %arg1 : i32, i32
  }
  func.func @transform_1(%arg0: i32, %arg1: i32) -> (i32, i32) {
    %c0_i32 = arith.constant 0 : i32
    return %arg0, %arg1 : i32, i32
  }
  func.func @transform_2(%arg0: i32, %arg1: i32) -> (i32, i32) {
    %c0_i32 = arith.constant 0 : i32
    return %arg0, %arg1 : i32, i32
  }
  func.func @transform_3(%arg0: i32, %arg1: i32) -> (i32, i32) {
    %c0_i32 = arith.constant 0 : i32
    %c0_i32_0 = arith.constant 0 : i32
    return %c0_i32, %arg1 : i32, i32
  }
  func.func @transform_4(%arg0: i32, %arg1: i32) -> (i32, i32) {
    %c0_i32 = arith.constant 0 : i32
    %c0_i32_0 = arith.constant 0 : i32
    return %c0_i32, %arg0 : i32, i32
  }
  func.func @transform_5(%arg0: i32, %arg1: i32) -> (i32, i32) {
    %c0_i32 = arith.constant 0 : i32
    %c0_i32_0 = arith.constant 0 : i32
    return %c0_i32, %arg0 : i32, i32
  }
  func.func @transform_6(%arg0: i32, %arg1: i32) -> (i32, i32) {
    %c0_i32 = arith.constant 0 : i32
    %c0_i32_0 = arith.constant 0 : i32
    return %c0_i32, %arg0 : i32, i32
  }
  func.func @transform_7(%arg0: i32, %arg1: i32) -> (i32, i32) {
    %c0_i32 = arith.constant 0 : i32
    %c0_i32_0 = arith.constant 0 : i32
    return %c0_i32, %arg0 : i32, i32
  }
  func.func @transform_8(%arg0: i32, %arg1: i32) -> (i32, i32) {
    %c0_i32 = arith.constant 0 : i32
    %c0_i32_0 = arith.constant 0 : i32
    return %c0_i32, %arg0 : i32, i32
  }
}

</mosaic_0001>

<bundles_post_ra>
// kernel: tpu_custom_call.1
= control target key start
LH: loop header
LB: loop body
LE: loop exit
PB: predicated region body
PF: predicated region fallthrough
CT: control target
= control target key end

     0   :  { %13 = vsyncpa [#allocation5], 0  ;;  %s619_s0 = inlined_call_operand.hbm [shape: f32[8,128], index: 0, kind: input, shape index: {}]   ;;  %s620_s1 = inlined_call_operand.hbm [shape: f32[128,128], index: 1, kind: input, shape index: {}]   ;;  %s621_s2 = inlined_call_operand.hbm [shape: f32[128,128], index: 2, kind: input, shape index: {}]   ;;  %s622_s3 = inlined_call_operand.vmem [shape: f32[1,128], index: 3, kind: input, shape index: {}]   ;;  %s623_s4 = inlined_call_operand.vmem [shape: f32[1,128], index: 4, kind: input, shape index: {}]   ;;  %s624_s5 = inlined_call_operand.vmem [shape: f32[1,128], index: 5, kind: input, shape index: {}]   ;;  %s625_s6 = inlined_call_operand.vmem [shape: f32[1,128], index: 6, kind: input, shape index: {}]   ;;  %s626_s7 = inlined_call_operand.vmem [shape: f32[1,128], index: 7, kind: input, shape index: {}]   ;;  %s627_s8 = inlined_call_operand.hbm [shape: f32[8,128], index: 8, kind: output, shape index: {}]  }
   0x1   :  { %14 = vsyncpa [#allocation8], 0 }
   0x2   :  { %15 = vsyncpa [#allocation6], 0  ;;  %s505_s27 = smov [#allocation7]  }
   0x3   :  { %s31_s28 = sshll.u32 %s505_s27, 4  ;;  %s32_s28 = int_to_ptr.vmem [resolvable:$true] %s31_s28 }
   0x4   :  { %s427_s29 = scalar_lea.vmem %s32_s28, 2048  ;;  %p432_p1 = scmp.lt.s32.totalorder %s32_s28, %s32_s28 }
   0x5   :  { %p428_p0 = scmp.ne.s32.totalorder %s32_s28, %s427_s29  ;;  %p433_p2 = scmp.lt.s32.totalorder %s427_s29, %s427_s29 }
   0x7   :  { %p434_p3 = por %p433_p2, %p432_p1 }
   0x9   :  { %p435_p4 = pnand %p434_p3, %p428_p0 }
   0xb   :  { %438 = shalt.err (!%p435_p4)
}
   0xc   :  { %s506_s30 = smov 128   ;;  %s507_s9 = smov 8  }
   0xd   :  { %37 = dma.hbm_to_vmem [thread:$0]  %s620_s1, 2048, %s32_s28, [#allocation8], %s506_s30, %s506_s30, %s507_s9  }
   0xe   :  { %s508_s12 = smov [#allocation4]   ;;  %s509_s14 = smov [#allocation9]  }
   0xf   :  { %s22_s13 = sshll.u32 %s508_s12, 4  ;;  %s43_s15 = sshll.u32 %s509_s14, 4  ;;  %s23_s13 = int_to_ptr.vmem [resolvable:$true] %s22_s13  ;;  %s44_s15 = int_to_ptr.vmem [resolvable:$true] %s43_s15 }
  0x10   :  { %s447_s16 = scalar_lea.vmem %s23_s13, 128  ;;  %p452_p6 = scmp.lt.s32.totalorder %s23_s13, %s23_s13 }
  0x11   :  { %p448_p5 = scmp.ne.s32.totalorder %s23_s13, %s447_s16  ;;  %p453_p7 = scmp.lt.s32.totalorder %s447_s16, %s447_s16 }
  0x13   :  { %p454_p8 = por %p453_p7, %p452_p6 }
  0x15   :  { %p455_p9 = pnand %p454_p8, %p448_p5 }
  0x17   :  { %458 = shalt.err (!%p455_p9)
}
  0x18   :  { %25 = dma.hbm_to_vmem [thread:$0]  %s619_s0, 128, %s23_s13, [#allocation5]  }
  0x19   :  { %s467_s19 = scalar_lea.vmem %s44_s15, 2048  ;;  %p472_p11 = scmp.lt.s32.totalorder %s44_s15, %s44_s15 }
  0x1a   :  { %p468_p10 = scmp.ne.s32.totalorder %s44_s15, %s467_s19  ;;  %p473_p12 = scmp.lt.s32.totalorder %s467_s19, %s467_s19 }
  0x1c   :  { %p474_p13 = por %p473_p12, %p472_p11 }
  0x1e   :  { %p475_p0 = pnand %p474_p13, %p468_p10 }
  0x20   :  { %478 = shalt.err (!%p475_p0)
}
  0x21   :  { %49 = dma.hbm_to_vmem [thread:$0]  %s621_s2, 2048, %s44_s15, [#allocation8], %s506_s30, %s506_s30, %s507_s9  }
  0x22   :  { %499 = dma.done.wait [#allocation5], 128  }
  0x23   :  { %500 = vsyncadd [#allocation5], 4294967168 }
  0x24   :  { %501 = dma.done.wait [#allocation8], 4096  }
  0x25   :  { %502 = vsyncadd [#allocation8], 4294963200  ;;  %v510_v0 = vmov 0.0   ;;  %vm511_vm0 = vmmov 0   ;;  %v92_v1 = vld [vmem:[#allocation7 + $0x78] sm:$0xff]  ;;  %v91_v3 = vld [vmem:[#allocation7 + $0x70] sm:$0xff]  ;;  %v282_v36 = vlaneseq }
  0x26   :  { %341 = vmatprep.subr.mxu0 %v510_v0  ;;  %376 = vmatprep.subr.mxu1 %v510_v0  ;;  %v189_v2 = vld [vmem:[#allocation9 + $0x78] sm:$0xff]  ;;  %v188_v4 = vld [vmem:[#allocation9 + $0x70] sm:$0xff]  ;;  %v90_v5 = vld [vmem:[#allocation7 + $0x68] sm:$0xff] }
  0x27   :  { %373 = vmatprep.mubr.msk.f32.mxu0 %vm511_vm0, %v510_v0  ;;  %408 = vmatprep.mubr.msk.f32.mxu1 %vm511_vm0, %v510_v0  ;;  %v187_v6 = vld [vmem:[#allocation9 + $0x68] sm:$0xff]  ;;  %v89_v7 = vld [vmem:[#allocation7 + $0x60] sm:$0xff]  ;;  %v88_v9 = vld [vmem:[#allocation7 + $0x58] sm:$0xff]  ;;  %v283_v40 = vshrl.u32 %v282_v36, 7 }
  0x28   :  { %342 = vmatpush3.xpose.msra.mxu0 %v92_v1  ;;  %377 = vmatpush3.xpose.msra.mxu1 %v189_v2  ;;  %v186_v8 = vld [vmem:[#allocation9 + $0x60] sm:$0xff]  ;;  %v185_v10 = vld [vmem:[#allocation9 + $0x58] sm:$0xff]  ;;  %v87_v11 = vld [vmem:[#allocation7 + $0x50] sm:$0xff] }
  0x29   :  { %343 = vmatprep.subr.mxu0 %v510_v0  ;;  %378 = vmatprep.subr.mxu1 %v510_v0  ;;  %v184_v12 = vld [vmem:[#allocation9 + $0x50] sm:$0xff]  ;;  %v86_v13 = vld [vmem:[#allocation7 + $0x48] sm:$0xff]  ;;  %v85_v15 = vld [vmem:[#allocation7 + $0x40] sm:$0xff]  ;;  %v284_v43 = vsub.s32 0, %v283_v40 }
  0x2a   :  { %v183_v14 = vld [vmem:[#allocation9 + $0x48] sm:$0xff]  ;;  %v182_v16 = vld [vmem:[#allocation9 + $0x40] sm:$0xff]  ;;  %v84_v17 = vld [vmem:[#allocation7 + $0x38] sm:$0xff] }
  0x2b   :  { %v181_v18 = vld [vmem:[#allocation9 + $0x38] sm:$0xff]  ;;  %v83_v19 = vld [vmem:[#allocation7 + $0x30] sm:$0xff]  ;;  %v82_v21 = vld [vmem:[#allocation7 + $0x28] sm:$0xff] }
  0x2c   :  { %344 = vmatpush3.xpose.msra.mxu0 %v91_v3  ;;  %379 = vmatpush3.xpose.msra.mxu1 %v188_v4  ;;  %v180_v20 = vld [vmem:[#allocation9 + $0x30] sm:$0xff]  ;;  %v179_v22 = vld [vmem:[#allocation9 + $0x28] sm:$0xff]  ;;  %v81_v23 = vld [vmem:[#allocation7 + $0x20] sm:$0xff] }
  0x2d   :  { %345 = vmatprep.subr.mxu0 %v510_v0  ;;  %380 = vmatprep.subr.mxu1 %v510_v0  ;;  %v178_v24 = vld [vmem:[#allocation9 + $0x20] sm:$0xff]  ;;  %v80_v25 = vld [vmem:[#allocation7 + $0x18] sm:$0xff]  ;;  %v79_v27 = vld [vmem:[#allocation7 + $0x10] sm:$0xff] }
  0x2e   :  { %v177_v26 = vld [vmem:[#allocation9 + $0x18] sm:$0xff]  ;;  %v176_v28 = vld [vmem:[#allocation9 + $0x10] sm:$0xff]  ;;  %v78_v29 = vld [vmem:[#allocation7 + $0x8] sm:$0xff] }
  0x2f   :  { %v175_v30 = vld [vmem:[#allocation9 + $0x8] sm:$0xff]  ;;  %v75_v31 = vld [vmem:[#allocation4] sm:$0xff]  ;;  %v77_v33 = vld [vmem:[#allocation7] sm:$0xff] }
  0x30   :  { %346 = vmatpush3.xpose.msra.mxu0 %v90_v5  ;;  %381 = vmatpush3.xpose.msra.mxu1 %v187_v6  ;;  %v305_v32 = vld [vmem:[%s622_s3] ss:$0 sm:$0xff]  ;;  %v174_v34 = vld [vmem:[#allocation9] sm:$0xff] }
  0x31   :  { %347 = vmatprep.subr.mxu0 %v510_v0  ;;  %382 = vmatprep.subr.mxu1 %v510_v0  ;;  %v172_v35 = vmul.f32 %v305_v32, %v75_v31  ;;  %v266_v37 = vld [vmem:[%s625_s6] sm:$0x1]  ;;  %s512_s6 = smov [#allocation10]  }
  0x32   :  { %v267_v38 = vld [vmem:[%s626_s7] sm:$0x1]  ;;  %s295_s7 = sshll.u32 %s512_s6, 4  ;;  %s296_s7 = int_to_ptr.vmem [resolvable:$true] %s295_s7 }
  0x33   :  { %v268_v39 = vmul.f32 %v267_v38, %v266_v37  ;;  %v265_v41 = vld [vmem:[%s624_s5] sm:$0x1]  ;;  %s479_s28 = scalar_lea.vmem %s296_s7, 128  ;;  %p484_p2 = scmp.lt.s32.totalorder %s296_s7, %s296_s7 }
  0x34   :  { %348 = vmatpush3.xpose.msra.mxu0 %v89_v7  ;;  %383 = vmatpush3.xpose.msra.mxu1 %v186_v8  ;;  %v306_v44 = vld [vmem:[%s623_s4] ss:$0 sm:$0xff]  ;;  %p480_p1 = scmp.ne.s32.totalorder %s296_s7, %s479_s28  ;;  %p485_p3 = scmp.lt.s32.totalorder %s479_s28, %s479_s28 }
  0x35   :  { %349 = vmatprep.subr.mxu0 %v510_v0  ;;  %384 = vmatprep.subr.mxu1 %v510_v0  ;;  %v269_v42 = vadd.f32 %v268_v39, %v265_v41 }
  0x36   :  { %p486_p4 = por %p485_p3, %p484_p2 }
  0x37   :  { %v285_v48 = vrot.slane %v269_v42, %v284_v43 }
  0x38   :  { %350 = vmatpush3.xpose.msra.mxu0 %v88_v9  ;;  %385 = vmatpush3.xpose.msra.mxu1 %v185_v10  ;;  %p487_p5 = pnand %p486_p4, %p480_p1 }
  0x39   :  { %351 = vmatprep.subr.mxu0 %v510_v0  ;;  %386 = vmatprep.subr.mxu1 %v510_v0 }
  0x3c   :  { %352 = vmatpush3.xpose.msra.mxu0 %v87_v11  ;;  %387 = vmatpush3.xpose.msra.mxu1 %v184_v12 }
  0x3d   :  { %353 = vmatprep.subr.mxu0 %v510_v0  ;;  %388 = vmatprep.subr.mxu1 %v510_v0 }
  0x40   :  { %354 = vmatpush3.xpose.msra.mxu0 %v86_v13  ;;  %389 = vmatpush3.xpose.msra.mxu1 %v183_v14 }
  0x41   :  { %355 = vmatprep.subr.mxu0 %v510_v0  ;;  %390 = vmatprep.subr.mxu1 %v510_v0 }
  0x44   :  { %356 = vmatpush3.xpose.msra.mxu0 %v85_v15  ;;  %391 = vmatpush3.xpose.msra.mxu1 %v182_v16 }
  0x45   :  { %357 = vmatprep.subr.mxu0 %v510_v0  ;;  %392 = vmatprep.subr.mxu1 %v510_v0 }
  0x48   :  { %358 = vmatpush3.xpose.msra.mxu0 %v84_v17  ;;  %393 = vmatpush3.xpose.msra.mxu1 %v181_v18 }
  0x49   :  { %359 = vmatprep.subr.mxu0 %v510_v0  ;;  %394 = vmatprep.subr.mxu1 %v510_v0 }
  0x4c   :  { %360 = vmatpush3.xpose.msra.mxu0 %v83_v19  ;;  %395 = vmatpush3.xpose.msra.mxu1 %v180_v20 }
  0x4d   :  { %361 = vmatprep.subr.mxu0 %v510_v0  ;;  %396 = vmatprep.subr.mxu1 %v510_v0 }
  0x50   :  { %362 = vmatpush3.xpose.msra.mxu0 %v82_v21  ;;  %397 = vmatpush3.xpose.msra.mxu1 %v179_v22 }
  0x51   :  { %363 = vmatprep.subr.mxu0 %v510_v0  ;;  %398 = vmatprep.subr.mxu1 %v510_v0 }
  0x54   :  { %364 = vmatpush3.xpose.msra.mxu0 %v81_v23  ;;  %399 = vmatpush3.xpose.msra.mxu1 %v178_v24 }
  0x55   :  { %365 = vmatprep.subr.mxu0 %v510_v0  ;;  %400 = vmatprep.subr.mxu1 %v510_v0 }
  0x58   :  { %366 = vmatpush3.xpose.msra.mxu0 %v80_v25  ;;  %401 = vmatpush3.xpose.msra.mxu1 %v177_v26 }
  0x59   :  { %367 = vmatprep.subr.mxu0 %v510_v0  ;;  %402 = vmatprep.subr.mxu1 %v510_v0 }
  0x5c   :  { %368 = vmatpush3.xpose.msra.mxu0 %v79_v27  ;;  %403 = vmatpush3.xpose.msra.mxu1 %v176_v28 }
  0x5d   :  { %369 = vmatprep.subr.mxu0 %v510_v0  ;;  %404 = vmatprep.subr.mxu1 %v510_v0 }
  0x60   :  { %370 = vmatpush3.xpose.msra.mxu0 %v78_v29  ;;  %405 = vmatpush3.xpose.msra.mxu1 %v175_v30 }
  0x61   :  { %371 = vmatprep.subr.mxu0 %v510_v0  ;;  %406 = vmatprep.subr.mxu1 %v510_v0 }
  0x64   :  { %372 = vmatpush3.xpose.msra.mxu0 %v77_v33  ;;  %407 = vmatpush3.xpose.msra.mxu1 %v174_v34 }
  0x67   :  { %374 = vmatmul.mubr.f32.vlgmr.msra.gmra.mxu0 %v75_v31  ;;  %409 = vmatmul.mubr.f32.vlgmr.msra.gmra.mxu1 %v172_v35 }
 0x127   :  { %v159_v45 = vpop.f32.mrf.mxu0  ;;  %v256_v46 = vpop.f32.mrf.mxu1 }
 0x128   :  { %v279_v47 = vmul.f32 %v306_v44, %v256_v46 }
 0x129   :  { %v375_v49 = vpop.f32.mrf.mxu0  ;;  %v410_v50 = vpop.f32.mrf.mxu1 }
 0x12a   :  { %v280_v51 = vadd.f32 %v279_v47, %v159_v45 }
 0x12c   :  { %v287_v52 = vadd.f32 %v285_v48, %v280_v51 }
 0x12e   :  { %288 = vst [vmem:[#allocation10] sm:$0xff] %v287_v52 }
 0x12f   :  { %490 = shalt.err (!%p487_p5)
}
 0x130   :  { %298 = dma.vmem_to_hbm [thread:$0]  %s296_s7, 128, %s627_s8, [#allocation6]  }
 0x131   :  { %503 = dma.done.wait [#allocation6], 128  }
 0x132   :  { %504 = vsyncadd [#allocation6], 4294967168 }
 0x133   :  { %302 = vsyncpa [#allocation5], 1 }
 0x134   :  { %303 = vsyncpa [#allocation8], 1 }
 0x135   :  { %304 = vsyncpa [#allocation6], 1 }

</bundles_post_ra>
